<compile_context>
chip_gen: v7x
topology: tpu7x:2x2x1
jax: 0.10.0
libtpu: 0.0.40
codegen_flags: <defaults>
</compile_context>

<pallas_src>
import numpy as np
import jax
import jax.numpy as jnp
from jax import lax
from jax.experimental import pallas as pl
from jax.experimental.pallas import tpu as pltpu

_LANE = 128
_SUBLANE = 8


def _round_up(x, m):
    return ((x + m - 1) // m) * m


def _vmem_limit(estimate_bytes):
    # estimated residency + margin; floor 8 MiB, capped under the smallest
    # physical VMEM per TensorCore (v7x: 64 MiB).
    return int(min(max(estimate_bytes + (2 << 20), 8 << 20), 64 << 20))


# ----------------------------- kernels --------------------------------------

def _layer1_kernel(a_ref, h0w1_ref, h1_ref):
    # h1 = relu(A @ (h0 * W1))  -- lane-dense bf16 aggregation, f32 accumulation.
    acc = jnp.dot(a_ref[...], h0w1_ref[...], preferred_element_type=jnp.float32)
    h1_ref[...] = jnp.maximum(acc, 0.0).astype(h1_ref.dtype)


def _layer2_kernel(a_ref, h1_ref, w2_ref, h2_ref):
    # h2 = relu((A @ h1) @ W2)
    agg = jnp.dot(a_ref[...], h1_ref[...], preferred_element_type=jnp.float32)
    h2_ref[...] = jnp.maximum(
        jnp.dot(agg, w2_ref[...], preferred_element_type=jnp.float32), 0.0
    ).astype(h2_ref.dtype)


def _pool_fc_kernel(h2_ref, mt_ref, wfc_ref, out_ref, acc_ref):
    # hg = M @ h2 accumulated over node-row blocks; out = hg @ Wfc at the end.
    i = pl.program_id(0)

    @pl.when(i == 0)
    def _():
        acc_ref[...] = jnp.zeros_like(acc_ref)

    # contract the node axis: (TM, G) x (TM, H) -> (G, H)
    acc_ref[...] += lax.dot_general(
        mt_ref[...], h2_ref[...],
        (((0,), (0,)), ((), ())),
        preferred_element_type=jnp.float32)

    @pl.when(i == pl.num_programs(0) - 1)
    def _():
        out_ref[...] = jnp.dot(acc_ref[...], wfc_ref[...],
                               preferred_element_type=jnp.float32)


# ----------------------------- wrapper ---------------------------------------

def gcn_forward(a_norm, h0, w1, w2, m_pool, w_fc, *, block_rows=None):
    """Pallas forward pass.

    a_norm: (N, N) normalized adjacency; h0: (N, 1) in-degree features;
    w1: (1, H); w2: (H, H); m_pool: (G, N) mean-pool matrix; w_fc: (H, C).
    """
    n = a_norm.shape[0]
    h = w1.shape[1]
    c = w_fc.shape[1]
    g = m_pool.shape[0]

    hp = _round_up(h, _LANE)      # lane-dense hidden dim
    cp = _round_up(c, _LANE)      # lane-dense class dim
    gp = _round_up(g, _SUBLANE)   # sublane-aligned graph count

    # Row-block size: multiple of 16 (bf16 sublane packing); pad N to a multiple.
    n16 = _round_up(n, 16)
    if block_rows is None:
        tm = 256 if n16 >= 512 else max(16, _round_up(max(n16 // 2, 16), 16))
    else:
        tm = _round_up(block_rows, 16)
    npad = _round_up(n16, tm)
    nblk = npad // tm

    f32, bf16 = jnp.float32, jnp.bfloat16

    # --- padded, dtype-converted operands (one-time O(N^2)/O(N*H) glue) ---
    a_p = jnp.zeros((npad, npad), f32).at[:n, :n].set(a_norm).astype(bf16)
    # rank-1 fold of the in_feats=1 projection: (A @ h0) @ W1 == A @ (h0 * W1)
    h0w1 = jnp.zeros((npad, hp), f32).at[:n, :h].set(h0 * w1).astype(bf16)
    w2_p = jnp.zeros((hp, hp), f32).at[:h, :h].set(w2)
    wfc_p = jnp.zeros((hp, cp), f32).at[:h, :c].set(w_fc)
    mt_p = jnp.zeros((npad, gp), f32).at[:n, :g].set(m_pool.T)

    # ---------------- layer 1: h1 = relu(A @ (h0*W1)) ----------------
    vmem1 = _vmem_limit(2 * tm * npad * 2 + 2 * npad * hp * 2 + 2 * tm * hp * 2)
    h1 = pl.pallas_call(
        _layer1_kernel,
        out_shape=jax.ShapeDtypeStruct((npad, hp), bf16),
        grid_spec=pltpu.PrefetchScalarGridSpec(
            num_scalar_prefetch=0,
            grid=(nblk,),
            in_specs=[
                pl.BlockSpec((tm, npad), lambda i: (i, 0)),   # row block of A
                pl.BlockSpec((npad, hp), lambda i: (0, 0)),   # h0*W1 (resident)
            ],
            out_specs=pl.BlockSpec((tm, hp), lambda i: (i, 0)),
        ),
        compiler_params=pltpu.CompilerParams(
            dimension_semantics=("parallel",),
            vmem_limit_bytes=vmem1),
    )(a_p, h0w1)

    # ---------------- layer 2: h2 = relu((A @ h1) @ W2) ----------------
    vmem2 = _vmem_limit(2 * tm * npad * 2 + 2 * npad * hp * 2
                        + 2 * hp * hp * 4 + 2 * tm * hp * 4)
    h2 = pl.pallas_call(
        _layer2_kernel,
        out_shape=jax.ShapeDtypeStruct((npad, hp), f32),
        grid_spec=pltpu.PrefetchScalarGridSpec(
            num_scalar_prefetch=0,
            grid=(nblk,),
            in_specs=[
                pl.BlockSpec((tm, npad), lambda i: (i, 0)),   # row block of A
                pl.BlockSpec((npad, hp), lambda i: (0, 0)),   # h1 (resident)
                pl.BlockSpec((hp, hp), lambda i: (0, 0)),     # W2 (resident)
            ],
            out_specs=pl.BlockSpec((tm, hp), lambda i: (i, 0)),
        ),
        compiler_params=pltpu.CompilerParams(
            dimension_semantics=("parallel",),
            vmem_limit_bytes=vmem2),
    )(a_p, h1, w2_p)

    # ---------------- mean-pool + fc: out = (M @ h2) @ Wfc ----------------
    vmem3 = _vmem_limit(2 * tm * hp * 4 + 2 * tm * gp * 4
                        + 2 * hp * cp * 4 + 2 * gp * cp * 4 + gp * hp * 4)
    out_p = pl.pallas_call(
        _pool_fc_kernel,
        out_shape=jax.ShapeDtypeStruct((gp, cp), f32),
        grid_spec=pltpu.PrefetchScalarGridSpec(
            num_scalar_prefetch=0,
            grid=(nblk,),
            in_specs=[
                pl.BlockSpec((tm, hp), lambda i: (i, 0)),     # row block of h2
                pl.BlockSpec((tm, gp), lambda i: (i, 0)),     # row block of M^T
                pl.BlockSpec((hp, cp), lambda i: (0, 0)),     # Wfc (resident)
            ],
            out_specs=pl.BlockSpec((gp, cp), lambda i: (0, 0)),
            scratch_shapes=[pltpu.VMEM((gp, hp), jnp.float32)],
        ),
        compiler_params=pltpu.CompilerParams(
            dimension_semantics=("arbitrary",),   # reduction over row blocks
            vmem_limit_bytes=vmem3),
    )(h2, mt_p, wfc_p)

    return out_p[:g, :c]


# ----------------------------- demo / check ----------------------------------

def build_batched_graph(nodes_per_graph):
    """Batched directed graph (ring + back edge per subgraph) as dense pieces:
    normalized adjacency, in-degree features, and the mean-pool matrix."""
    total = sum(nodes_per_graph)
    A = np.zeros((total, total), dtype=np.float32)   # A[dst, src] = 1
    offset = 0
    for ng in nodes_per_graph:
        for s in range(ng):
            d = (s + 1) % ng
            A[offset + d, offset + s] = 1.0
            A[offset + s, offset + d] = 1.0           # back edge
        offset += ng

    in_deg = A.sum(axis=1)
    out_deg = A.sum(axis=0)
    d_in_isqrt = 1.0 / np.sqrt(np.maximum(in_deg, 1.0))
    d_out_isqrt = 1.0 / np.sqrt(np.maximum(out_deg, 1.0))
    a_norm = d_in_isqrt[:, None] * A * d_out_isqrt[None, :]   # Din^-1/2 A Dout^-1/2

    h0 = in_deg.reshape(-1, 1).astype(np.float32)    # g.in_degrees().view(-1,1).float()

    M = np.zeros((len(nodes_per_graph), total), dtype=np.float32)
    offset = 0
    for gi, ng in enumerate(nodes_per_graph):
        M[gi, offset:offset + ng] = 1.0 / ng
        offset += ng

    return (jnp.asarray(a_norm, jnp.float32),
            jnp.asarray(h0, jnp.float32),
            jnp.asarray(M, jnp.float32))


if __name__ == "__main__":
    in_dim, hidden_dim, n_classes = 1, 8, 8
    nodes_per_graph = [16, 16]   # 2 graphs, 32 nodes -> exercises 2 row blocks

    a_norm, h0, m_pool = build_batched_graph(nodes_per_graph)

    key = jax.random.PRNGKey(0)
    k1, k2, k3 = jax.random.split(key, 3)
    w1 = jax.random.normal(k1, (in_dim, hidden_dim), dtype=jnp.float32) * 0.5
    w2 = jax.random.normal(k2, (hidden_dim, hidden_dim), dtype=jnp.float32) * 0.5
    w_fc = jax.random.normal(k3, (hidden_dim, n_classes), dtype=jnp.float32) * 0.5

    out = gcn_forward(a_norm, h0, w1, w2, m_pool, w_fc)
    out = jax.block_until_ready(out)

    # pure-f32 reference (precision=HIGHEST so XLA does not use low-precision MXU passes)
    P = lax.Precision.HIGHEST
    ref_h = jnp.maximum(jnp.dot(a_norm, jnp.dot(h0, w1, precision=P), precision=P), 0.0)
    ref_h = jnp.maximum(jnp.dot(jnp.dot(a_norm, ref_h, precision=P), w2, precision=P), 0.0)
    ref = jnp.dot(jnp.dot(m_pool, ref_h, precision=P), w_fc, precision=P)

    # bf16 adjacency/activations on the MXU -> relaxed tolerance (structural
    # errors would be orders of magnitude larger than this).
    assert jnp.allclose(out, ref, atol=1e-1, rtol=1e-1), "mismatch vs reference"
    print("KERNEL_OK")
</pallas_src>

<mosaic_0001>
module attributes {stable_mosaic.version = 11 : i64} {
  func.func @_layer1_kernel(%arg0: i32, %arg1: memref<16x32xbf16, #tpu.memory_space<vmem>>, %arg2: memref<32x128xbf16, #tpu.memory_space<vmem>>, %arg3: memref<16x128xbf16, #tpu.memory_space<vmem>>) attributes {dimension_semantics = [#tpu.dimension_semantics<parallel>], iteration_bounds = array<i64: 2>, scalar_prefetch = 0 : i64, scratch_operands = 0 : i64, tpu.core_type = #tpu.core_type<tc>, window_params = [{transform_indices = @transform_0, window_bounds = array<i64: 16, 32>}, {pipeline_mode = #tpu.pipeline_mode<synchronous>, transform_indices = @transform_1, window_bounds = array<i64: 32, 128>}, {transform_indices = @transform_2, window_bounds = array<i64: 16, 128>}]} {
    %c0 = arith.constant 0 : index
    %c0_0 = arith.constant 0 : index
    %0 = vector.load %arg1[%c0, %c0_0] : memref<16x32xbf16, #tpu.memory_space<vmem>>, vector<16x32xbf16>
    %c0_1 = arith.constant 0 : index
    %c0_2 = arith.constant 0 : index
    %1 = vector.load %arg2[%c0_1, %c0_2] : memref<32x128xbf16, #tpu.memory_space<vmem>>, vector<32x128xbf16>
    %cst = arith.constant dense<0.000000e+00> : vector<16x128xf32>
    %2 = tpu.matmul %0, %1, %cst {dimension_numbers = #tpu.dot_dimension_numbers<[1], [0], [0], [1], [0, 0, 1, 1], [], []>} : vector<16x32xbf16>, vector<32x128xbf16>, vector<16x128xf32> -> vector<16x128xf32>
    %cst_3 = arith.constant 0.000000e+00 : f32
    %3 = vector.broadcast %cst_3 : f32 to vector<16x128xf32>
    %4 = arith.maximumf %2, %3 : vector<16x128xf32>
    %5 = arith.truncf %4 : vector<16x128xf32> to vector<16x128xbf16>
    %c0_4 = arith.constant 0 : index
    %c0_5 = arith.constant 0 : index
    %6 = vector.load %arg3[%c0_4, %c0_5] : memref<16x128xbf16, #tpu.memory_space<vmem>>, vector<16x128xbf16>
    tpu.vector_store %arg3[%c0_4, %c0_5], %5 {strides = array<i32>} : memref<16x128xbf16, #tpu.memory_space<vmem>>, vector<16x128xbf16>,
    return
  }
  func.func @transform_0(%arg0: i32) -> (i32, i32) {
    %c0_i32 = arith.constant 0 : i32
    %c0_i32_0 = arith.constant 0 : i32
    return %arg0, %c0_i32 : i32, i32
  }
  func.func @transform_1(%arg0: i32) -> (i32, i32) {
    %c0_i32 = arith.constant 0 : i32
    %c0_i32_0 = arith.constant 0 : i32
    %c0_i32_1 = arith.constant 0 : i32
    return %c0_i32, %c0_i32_0 : i32, i32
  }
  func.func @transform_2(%arg0: i32) -> (i32, i32) {
    %c0_i32 = arith.constant 0 : i32
    %c0_i32_0 = arith.constant 0 : i32
    return %arg0, %c0_i32 : i32, i32
  }
}

</mosaic_0001>

<bundles_post_ra>
// kernel: tpu_custom_call.1
= control target key start
LH: loop header
LB: loop body
LE: loop exit
PB: predicated region body
PF: predicated region fallthrough
CT: control target
= control target key end

     0   :  { %7 = vsyncpa [#allocation3], 0  ;;  %s826_s0 = inlined_call_operand.hbm [shape: bf16[32,32], index: 0, kind: input, shape index: {}]   ;;  %s827_s1 = inlined_call_operand.hbm [shape: bf16[32,128], index: 1, kind: input, shape index: {}]   ;;  %s828_s2 = inlined_call_operand.hbm [shape: bf16[32,128], index: 2, kind: output, shape index: {}]  }
   0x1   :  { %9 = vsyncpa [#allocation3 + $0x1], 0 }
   0x2   :  { %10 = vsyncpa [#allocation6], 0 }
   0x3   :  { %11 = vsyncpa [#allocation4], 0 }
   0x4   :  { %13 = vsyncpa [#allocation4 + $0x1], 0  ;;  %s619_s9 = smov 0   ;;  %s621_s10 = smov 0  }
   0x5   :  { %s623_s11 = smov 0   ;;  %s625_s12 = smov 0  }
   0x6 LB: > { %s640_s13 = sadd.s32 4294967295, %s593_s12   ;;  %s357_s14 = sadd.s32 4294967294, %s593_s12   ;;  %s593_s12 = sphi %s625_s12, %s848_s12   ;;  %s589_s11 = sphi %s623_s11, %s847_s11   ;;  %s585_s10 = sphi %s621_s10, %s846_s10   ;;  %s581_s9 = sphi %s619_s9, %s845_s9  }
   0x7   : > { %p39_p0 = scmp.ne.s32.totalorder %s585_s10, %s581_s9  ;;  %p829_p1 = scmp.eq.s32.totalorder %s640_s13, 0 }
   0x8   : > { %p90_p3 = scmp.eq.s32.totalorder %s357_s14, 1  ;;  %p358_p5 = scmp.ge.s32.totalorder %s593_s12, 1 }
   0x9   : > { %p649_p4 = por %p829_p1, %p39_p0  ;;  %p97_p7 = scmp.lt.s32.totalorder %s593_s12, 3 }
   0xa   : > { %p654_p6 = por %p90_p3, %p39_p0  ;;  %s595_s18 = smov [#allocation5]  }
   0xb   : > { %s832_s15 = scalar_select %p649_p4, 1, 0 }
   0xc   : > { %s833_s16 = scalar_select %p654_p6, 1, 0 }
   0xd   : > { %p659_p8 = pnand %p358_p5, %p97_p7  ;;  %s109_s19 = sshll.u32 %s595_s18, 4  ;;  %s663_s19 = int_to_ptr.vmem [resolvable:$true] %s109_s19 }
   0xe   : > { %s675_s21 = sadd.s32 1, %s593_s12   ;;  %s26_s22 = sadd.s32 1, %s589_s11 }
   0xf   : > { %s834_s17 = scalar_select %p659_p8, 1, 0 }
  0x10   : > { %p407_p9 = pneg %p659_p8  ;;  %s23_s23 = ssub.s32 %s593_s12, %s675_s21 }
  0x11   : > { %s465_s26 = scalar_lea.hbm %s827_s1, 256 }
  0x12   : > { %p670_p11 = pnand %p407_p9, %p829_p1  ;;  %p466_p12 = scmp.ne.s32.totalorder %s827_s1, %s465_s26 }
  0x13   : > { %p472_p5 = scmp.lt.u32.totalorder %s465_s26, %s827_s1 }
  0x14   : > { %p467_p13 = pneg %p670_p11 }
  0x16   : > { %p468_p0 = pnand %p467_p13, %p466_p12 }
  0x18   : > { %p469_p3 = pneg %p468_p0 }
  0x1a   : > { %p474_p7 = pnand %p472_p5, %p469_p3 }
  0x1c   : > { %477 = shalt.err (!%p474_p7)
}
  0x1d   : > { %s478_s3 = scalar_lea.vmem %s663_s19, 256  ;;  %p486_p2 = scmp.lt.s32.totalorder %s663_s19, %s663_s19 }
  0x1e   : > { %p479_p9 = scmp.ne.s32.totalorder %s663_s19, %s478_s3  ;;  %p487_p6 = scmp.lt.s32.totalorder %s478_s3, %s478_s3 }
  0x20   : > { %p481_p10 = pnand %p479_p9, %p467_p13  ;;  %p488_p4 = por %p487_p6, %p486_p2 }
  0x22   : > { %p482_p1 = pneg %p481_p10 }
  0x24   : > { %p489_p8 = pnand %p488_p4, %p482_p1 }
  0x26   : > { %492 = shalt.err (!%p489_p8)
}
  0x27   : > { %s596_s4 = smov 64   ;;  %s597_s5 = smov 4  }
  0x28   : > { %410 = dma.hbm_to_vmem [thread:$0]  (!%p670_p11), %s827_s1, 256, %s663_s19, [#allocation6], %s596_s4, %s596_s4, %s597_s5  }
  0x29   : > { %p24_p1 = scmp.eq.s32.totalorder %s23_s23, 0  ;;  %p33_p2 = scmp.ne.s32.totalorder %s589_s11, %s585_s10 }
  0x2a   : > { %p34_p4 = scmp.eq.s32.totalorder %s593_s12, 0  ;;  %p420_p6 = scmp.lt.s32.totalorder %s593_s12, 2 }
  0x2b   : > { %s709_s8 = scalar_select %p24_p1, %s589_s11, %s26_s22  }
  0x2c   : > { %p35_p8 = por %p34_p4, %p33_p2  ;;  %p836_p10 = scmp.eq.s32.totalorder %s640_s13, 1 }
  0x2d   : > { %s123_s18 = sand.u32 1, %s589_s11   ;;  %s379_s20 = sshll.u32 %s593_s12, 7 }
  0x2e   : > { %p713_p12 = por %p836_p10, %p33_p2  ;;  %s361_s24 = sshll.u32 %s123_s18, 3 }
  0x2f   : > { %s722_s27 = scalar_lea.hbm %s826_s0, %s379_s20  ;;  %s127_s19 = scalar_lea.vmem [#allocation2], %s361_s24 }
  0x30   : > { %s134_s22 = sshll.u32 %s127_s19, 4  ;;  %p724_p11 = pnand %p420_p6, %p35_p8  ;;  %s728_s22 = int_to_ptr.vmem [resolvable:$true] %s134_s22 }
  0x31   : > { %s730_s28 = scalar_lea.sflag [#allocation3], %s123_s18  ;;  %s493_s29 = scalar_lea.hbm %s722_s27, 128 }
  0x32   : > { %p494_p13 = scmp.ne.s32.totalorder %s722_s27, %s493_s29  ;;  %p495_p0 = pneg %p724_p11 }
  0x33   : > { %s498_s6 = scalar_lea.hbm %s826_s0, 256  ;;  %p499_p7 = scmp.lt.u32.totalorder %s722_s27, %s826_s0 }
  0x34   : > { %p496_p3 = pnand %p495_p0, %p494_p13  ;;  %p500_p9 = scmp.lt.u32.totalorder %s498_s6, %s493_s29 }
  0x35   : > { %p502_p2 = scmp.lt.u32.totalorder %s493_s29, %s722_s27 }
  0x36   : > { %p497_p5 = pneg %p496_p3  ;;  %p501_p1 = por %p500_p9, %p499_p7 }
  0x38   : > { %p503_p4 = por %p502_p2, %p501_p1 }
  0x3a   : > { %p504_p6 = pnand %p503_p4, %p497_p5 }
  0x3c   : > { %507 = shalt.err (!%p504_p6)
}
  0x3d   : > { %s508_s18 = scalar_lea.vmem %s728_s22, 128  ;;  %s598_s24 = smov [#allocation2]  }
  0x3e   : > { %p509_p8 = scmp.ne.s32.totalorder %s728_s22, %s508_s18  ;;  %s513_s25 = sshll.u32 %s598_s24, 4  ;;  %s514_s25 = int_to_ptr.vmem [resolvable:$false] %s513_s25 }
  0x3f   : > { %s515_s26 = scalar_lea.vmem %s514_s25, 256  ;;  %p516_p3 = scmp.lt.s32.totalorder %s728_s22, %s514_s25 }
  0x40   : > { %p511_p10 = pnand %p509_p8, %p495_p0  ;;  %p517_p7 = scmp.lt.s32.totalorder %s515_s26, %s508_s18 }
  0x42   : > { %p512_p13 = pneg %p511_p10  ;;  %p518_p9 = por %p517_p7, %p516_p3 }
  0x44   : > { %p519_p1 = pnand %p518_p9, %p512_p13 }
  0x46   : > { %522 = shalt.err (!%p519_p1)
}
  0x47   : > { %414 = dma.hbm_to_vmem [thread:$0]  (!%p724_p11), %s722_s27, 128, %s728_s22, %s730_s28, %s596_s4, %s596_s4, %s597_s5  }
  0x48   : > { %p839_p0 = scmp.ne.s32.totalorder %s834_s17, 0 }
  0x49   : > { %s764_s19 = sand.u32 (!%p839_p0), 1, %s585_s10   ;;  %p840_p5 = scmp.ne.s32.totalorder (!%p839_p0), %s832_s15, 0 }
  0x4a   : > { %146 = sbr.rel (%p839_p0) target bundleno = 327 (0x147), region = 28  ;;  %s365_s29 = sshll.u32 (!%p839_p0), %s764_s19, 3 }
  0x4b   : > { %s149_s30 = scalar_lea.sflag (!%p839_p0), [#allocation3], %s764_s19  ;;  %s152_s3 = scalar_lea.vmem (!%p839_p0), [#allocation2], %s365_s29 }
  0x51   : > { %568 = dma.done.wait (%p840_p5), %s149_s30, 128  }
  0x52   : > { %570 = vsyncadd (%p840_p5), %s149_s30, 4294967168  ;;  %p841_p2 = scmp.eq.s32.totalorder %s640_s13, 0 }
  0x54   : > { %572 = dma.done.wait (%p841_p2), [#allocation6], 256   ;;  %p842_p11 = pmov %p841_p2 }
  0x55   : > { %v599_v0 = vmov 0.0   ;;  %vm600_vm0 = vmmov 0   ;;  %v462_v1 = vld [vmem:[#allocation5] sm:$0xff]   ;;  %v463_v2 = vld [vmem:[#allocation5 + $0x8] sm:$0xff]   ;;  %v464_v3 = vld [vmem:[%s152_s3] sm:$0xff]   ;;  %vm203_vm1 = vcmask 261120  }
  0x56   : > { %574 = vsyncadd (%p842_p11), [#allocation6], 4294967040  ;;  %391 = vmatprep.subr.bf16.mxu0 %v599_v0  ;;  %395 = vmatprep.mubr.msk.bf16.mxu0 %vm600_vm0, %v599_v0  ;;  %s176_s15 = scalar_lea.vmem [#allocation7], %s365_s29  ;;  %s382_s4 = sshll.u32 %s640_s13, 7 }
  0x57   : > { %392 = vmatpush3.bf16.msra.mxu0 %v462_v1  ;;  %s274_s17 = sshll.u32 %s176_s15, 4  ;;  %s782_s22 = scalar_lea.hbm %s828_s2, %s382_s4  ;;  %s777_s17 = int_to_ptr.vmem [resolvable:$true] %s274_s17 }
  0x58   : > { %393 = vmatprep.subr.bf16.mxu0 %v599_v0  ;;  %s261_s23 = scalar_lea.sflag [#allocation4], %s764_s19  ;;  %s523_s28 = scalar_lea.vmem %s777_s17, 128 }
  0x59   : > { %p524_p4 = scmp.ne.s32.totalorder %s777_s17, %s523_s28  ;;  %s601_s13 = smov [#allocation7]  }
  0x5a   : > { %s527_s6 = sshll.u32 %s601_s13, 4  ;;  %s528_s6 = int_to_ptr.vmem [resolvable:$false] %s527_s6 }
  0x5b   : > { %394 = vmatpush3.bf16.msra.mxu0 %v463_v2  ;;  %p525_p6 = pnand %p524_p4, %p713_p12  ;;  %s529_s7 = scalar_lea.vmem %s528_s6, 256 }
  0x5c   : > { %p530_p10 = scmp.lt.s32.totalorder %s777_s17, %s528_s6  ;;  %p531_p13 = scmp.lt.s32.totalorder %s529_s7, %s523_s28 }
  0x5d   : > { %p526_p8 = pneg %p525_p6 }
  0x5e   : > { %396 = vmatmul.mubr.msk.bf16.vlgmr.msra.gmra.mrb[0].mxu0 %vm203_vm1, %v464_v3  ;;  %p532_p3 = por %p531_p13, %p530_p10 }
  0x60   : > { %p533_p7 = pnand %p532_p3, %p526_p8 }
 0x131   : > { %v241_v4 = vpop.f32.mrb[0].mxu0 }
 0x132   : > { %v397_v5 = vpop.f32.mrb[1].mxu0  ;;  %v248_v7 = vmax.f32 %v241_v4, 0.0 }
 0x133   : > { %v244_v6 = vpop.f32.mrb[2].mxu0 }
 0x134   : > { %v249_v8 = vmax.f32 %v244_v6, 0.0  ;;  %v398_v9 = vpop.f32.mrb[3].mxu0 }
 0x136   : > { %v386_v10 = vpack.c.bf16 %v249_v8, %v248_v7 }
 0x138   : > { %387 = vst [vmem:[%s176_s15] sm:$0xff] %v386_v10  }
 0x139   : > { %536 = shalt.err (!%p533_p7)
}
 0x13a   : > { %s537_s20 = scalar_lea.hbm %s782_s22, 128  ;;  %s541_s25 = scalar_lea.hbm %s828_s2, 256 }
 0x13b   : > { %p538_p9 = scmp.ne.s32.totalorder %s782_s22, %s537_s20  ;;  %p542_p5 = scmp.lt.u32.totalorder %s782_s22, %s828_s2 }
 0x13c   : > { %p543_p2 = scmp.lt.u32.totalorder %s541_s25, %s537_s20  ;;  %p545_p4 = scmp.lt.u32.totalorder %s537_s20, %s782_s22 }
 0x13d   : > { %p539_p1 = pnand %p538_p9, %p713_p12 }
 0x13e   : > { %p544_p11 = por %p543_p2, %p542_p5 }
 0x13f   : > { %p540_p0 = pneg %p539_p1 }
 0x140   : > { %p546_p6 = por %p545_p4, %p544_p11 }
 0x142   : > { %p547_p8 = pnand %p546_p6, %p540_p0 }
 0x144   : > { %550 = shalt.err (!%p547_p8)
}
 0x145   : > { %s602_s30 = smov 64   ;;  %s603_s3 = smov 4  }
 0x146   : > { %405 = dma.vmem_to_hbm [thread:$0]  (%p713_p12), %s777_s17, 128, %s782_s22, %s261_s23, %s602_s30, %s602_s30, %s603_s3  }
 0x147 PF: > { %s289_s15 = sand.u32 1, %s581_s9   ;;  %p843_p10 = scmp.ne.s32.totalorder %s833_s16, 0 }
 0x148   : > { %p844_p13 = scmp.ge.s32.totalorder %s593_s12, 2  ;;  %s290_s4 = scalar_lea.sflag [#allocation4], %s289_s15 }
 0x14a   : > { %p416_p3 = pnand %p844_p13, %p843_p10 }
 0x14c   : > { %576 = dma.done.wait (!%p416_p3), %s290_s4, 128  }
 0x14d   : > { %578 = vsyncadd (!%p416_p3), %s290_s4, 4294967168  ;;  %p16_p7 = scmp.ge.s32.totalorder %s675_s21, 4   ;;  %s845_s9 = smov %s585_s10 }
 0x14e   : > { %s846_s10 = smov %s589_s11  ;;  %s847_s11 = smov %s709_s8 }
 0x14f   : > { %s848_s12 = smov %s675_s21  ;;  %18 = sbr.rel (!%p16_p7) target bundleno = 6 (0x6), region = 77 }
 0x156   :  { %295 = vsyncpa [#allocation3], 1 }
 0x157   :  { %297 = vsyncpa [#allocation3 + $0x1], 1 }
 0x158   :  { %298 = vsyncpa [#allocation6], 1 }
 0x159   :  { %299 = vsyncpa [#allocation4], 1 }
 0x15a   :  { %301 = vsyncpa [#allocation4 + $0x1], 1 }

</bundles_post_ra>
